<compile_context>
chip_gen: v6e
topology: v6e:2x2x1
jax: 0.10.0
libtpu: 0.0.40
codegen_flags: <defaults>
</compile_context>

<pallas_src>
import jax
import jax.numpy as jnp
from jax.experimental import pallas as pl
from jax.experimental.pallas import tpu as pltpu


def _round_up(x, m):
    return (x + m - 1) // m * m


def critic_v_kernel(x_ref,
                    w1_ref, b1_ref,
                    w2_ref, b2_ref,
                    w3_ref, b3_ref,
                    w4t_ref, b4_ref,
                    out_ref):
    """Fused 4-layer MLP forward for one batch tile; weights are VMEM-resident.

    Emits a lane-dense (1, TB) output row: the final (h_dim -> 1) layer is an
    MXU dot contracting the hidden axis against the w4 row.
    """
    h = jnp.dot(x_ref[...], w1_ref[...],
                preferred_element_type=jnp.float32) + b1_ref[...]
    h = jnp.maximum(h, 0.0)

    h = jnp.dot(h, w2_ref[...],
                preferred_element_type=jnp.float32) + b2_ref[...]
    h = jnp.maximum(h, 0.0)

    h = jnp.dot(h, w3_ref[...],
                preferred_element_type=jnp.float32) + b3_ref[...]
    h = jnp.maximum(h, 0.0)

    # (1, h) x (TB, h) contracted over h -> (1, TB): lane-dense output row.
    val = jax.lax.dot_general(
        w4t_ref[...], h,
        dimension_numbers=(((1,), (1,)), ((), ())),
        preferred_element_type=jnp.float32)
    out_ref[...] = (val + b4_ref[0]).astype(out_ref.dtype)


def critic_v_forward(state, belief, params, *, block_b=512):
    """Batched Critic_V forward. `params` = (w1, b1, w2, b2, w3, b3, w4, b4)
    with weights stored as [in_features, out_features] and biases as [1, out]."""
    B = state.shape[0]
    w1, b1, w2, b2, w3, b3, w4, b4 = params
    in_dim, h_dim = w1.shape

    # Single layer-1 matmul: the host concat is a trivial fused XLA copy and it
    # halves the per-step MXU passes and input DMA descriptors in the kernel.
    x = jnp.concatenate((state, belief), axis=1)
    assert x.shape[1] == in_dim

    # Trace-time (free) weight reshuffles.
    w4t = w4.reshape(1, h_dim)      # (h, 1) -> (1, h) row for the lane-dense dot
    b4s = b4.reshape(1)             # scalar bias -> SMEM

    # --- Batch tile sizing ---------------------------------------------------
    # Target >= 2 grid steps when possible (v7x has 2 TensorCores to shard the
    # "parallel" axis across); otherwise take one full-extent tile.
    TB = min(block_b, _round_up(pl.cdiv(B, 2), 8))
    TB = max(8, _round_up(TB, 8))                   # always sublane-aligned
    if TB < _round_up(B, 8):
        # Multi-step grid: lane-dense (1, TB) output block needs TB % 128 == 0.
        TB = _round_up(TB, 128)
    if TB >= B:
        # Collapsed to a single step: one full-extent tile.
        TB = _round_up(B, 8)

    # No host-side pad of the activations. Only the output array is rounded up
    # to a whole number of tiles (all its blocks stay fully in bounds); the
    # ragged tail rows are discarded by the slice at the end.
    Bp = _round_up(B, TB)
    grid = (Bp // TB,)

    batch_spec = pl.BlockSpec((TB, in_dim), lambda i: (i, 0))
    resident = lambda a: pl.BlockSpec(a.shape, lambda i: (0, 0))

    flops = 2 * Bp * (in_dim * h_dim + 2 * h_dim * h_dim + h_dim)
    bytes_accessed = 4 * (Bp * (in_dim + 1) + in_dim * h_dim
                          + 2 * h_dim * h_dim + 4 * h_dim + 1)

    out = pl.pallas_call(
        critic_v_kernel,
        out_shape=jax.ShapeDtypeStruct((1, Bp), jnp.float32),
        grid=grid,
        in_specs=[
            batch_spec,                                          # x tile
            resident(w1), resident(b1),
            resident(w2), resident(b2),
            resident(w3), resident(b3),
            resident(w4t),
            pl.BlockSpec(memory_space=pltpu.MemorySpace.SMEM),   # b4 scalar
        ],
        out_specs=pl.BlockSpec((1, TB), lambda i: (0, i)),       # lane-dense out
        compiler_params=pltpu.CompilerParams(
            dimension_semantics=("parallel",)),
        cost_estimate=pl.CostEstimate(
            flops=flops, transcendentals=0, bytes_accessed=bytes_accessed),
    )(x, w1, b1, w2, b2, w3, b3, w4t, b4s)

    return out[0, :B].reshape(B, 1)


def init_params(key, s_dim, belief_dim, h_dim):
    """Deterministic synthetic parameters (PyTorch-Linear-like uniform init).
    Weights stored as [in, out]; biases as [1, out]."""
    in_dim = s_dim + belief_dim
    dims = [(in_dim, h_dim), (h_dim, h_dim), (h_dim, h_dim), (h_dim, 1)]
    params = []
    for fi, fo in dims:
        kw, kb, key = jax.random.split(key, 3)
        bound = 1.0 / jnp.sqrt(jnp.float32(fi))
        w = jax.random.uniform(kw, (fi, fo), jnp.float32, -bound, bound)
        b = jax.random.uniform(kb, (1, fo), jnp.float32, -bound, bound)
        params += [w, b]
    return tuple(params)


def _reference(state, belief, params):
    x = jnp.concatenate((state, belief), axis=1)
    w1, b1, w2, b2, w3, b3, w4, b4 = params
    h = jnp.maximum(x @ w1 + b1, 0.0)
    h = jnp.maximum(h @ w2 + b2, 0.0)
    h = jnp.maximum(h @ w3 + b3, 0.0)
    return h @ w4 + b4


if __name__ == "__main__":
    # Full-f32 matmul precision everywhere so the host reference matches the
    # kernel's f32 MXU accumulation.
    jax.config.update("jax_default_matmul_precision", "highest")

    s_dim, belief_dim, h_dim = 16, 16, 32

    key = jax.random.PRNGKey(0)
    k_state, k_belief, k_params = jax.random.split(key, 3)
    params = init_params(k_params, s_dim, belief_dim, h_dim)

    # Test 1: small batch -> single full-extent tile.
    batch = 8
    state = jax.random.normal(k_state, (batch, s_dim), jnp.float32)
    belief = jax.random.normal(k_belief, (batch, belief_dim), jnp.float32)
    val = jax.block_until_ready(critic_v_forward(state, belief, params))
    ref = _reference(state, belief, params)
    assert val.shape == (batch, 1)
    assert jnp.allclose(val, ref, atol=1e-4, rtol=1e-4), \
        float(jnp.max(jnp.abs(val - ref)))

    # Test 2: non-divisible batch with block_b=128 -> 3 grid steps, VMEM-resident
    # weights across steps, ragged tail tile, lane-dense tiled output.
    batch2 = 300
    k_s2, k_b2 = jax.random.split(jax.random.PRNGKey(1))
    state2 = jax.random.normal(k_s2, (batch2, s_dim), jnp.float32)
    belief2 = jax.random.normal(k_b2, (batch2, belief_dim), jnp.float32)
    val2 = jax.block_until_ready(
        critic_v_forward(state2, belief2, params, block_b=128))
    ref2 = _reference(state2, belief2, params)
    assert val2.shape == (batch2, 1)
    assert jnp.allclose(val2, ref2, atol=1e-4, rtol=1e-4), \
        float(jnp.max(jnp.abs(val2 - ref2)))

    # Test 3: single-step grid with a batch that is not a multiple of 8
    # (tail rows of the tile read out-of-bounds and their lanes are sliced off).
    batch3 = 50
    k_s3, k_b3 = jax.random.split(jax.random.PRNGKey(2))
    state3 = jax.random.normal(k_s3, (batch3, s_dim), jnp.float32)
    belief3 = jax.random.normal(k_b3, (batch3, belief_dim), jnp.float32)
    val3 = jax.block_until_ready(critic_v_forward(state3, belief3, params))
    ref3 = _reference(state3, belief3, params)
    assert val3.shape == (batch3, 1)
    assert jnp.allclose(val3, ref3, atol=1e-4, rtol=1e-4), \
        float(jnp.max(jnp.abs(val3 - ref3)))

    print("KERNEL_OK")
</pallas_src>

<mosaic_0001>
module attributes {stable_mosaic.version = 11 : i64} {
  func.func @critic_v_kernel(%arg0: i32, %arg1: memref<8x32xf32, #tpu.memory_space<vmem>>, %arg2: memref<32x32xf32, #tpu.memory_space<vmem>>, %arg3: memref<1x32xf32, #tpu.memory_space<vmem>>, %arg4: memref<32x32xf32, #tpu.memory_space<vmem>>, %arg5: memref<1x32xf32, #tpu.memory_space<vmem>>, %arg6: memref<32x32xf32, #tpu.memory_space<vmem>>, %arg7: memref<1x32xf32, #tpu.memory_space<vmem>>, %arg8: memref<1x32xf32, #tpu.memory_space<vmem>>, %arg9: memref<1xf32, #tpu.memory_space<smem>>, %arg10: memref<1x8xf32, #tpu.memory_space<vmem>>) attributes {dimension_semantics = [#tpu.dimension_semantics<parallel>], iteration_bounds = array<i64: 1>, scalar_prefetch = 0 : i64, scratch_operands = 0 : i64, tpu.core_type = #tpu.core_type<tc>, window_params = [{transform_indices = @transform_0, window_bounds = array<i64: 8, 32>}, {pipeline_mode = #tpu.pipeline_mode<synchronous>, transform_indices = @transform_1, window_bounds = array<i64: 32, 32>}, {pipeline_mode = #tpu.pipeline_mode<synchronous>, transform_indices = @transform_2, window_bounds = array<i64: 1, 32>}, {pipeline_mode = #tpu.pipeline_mode<synchronous>, transform_indices = @transform_3, window_bounds = array<i64: 32, 32>}, {pipeline_mode = #tpu.pipeline_mode<synchronous>, transform_indices = @transform_4, window_bounds = array<i64: 1, 32>}, {pipeline_mode = #tpu.pipeline_mode<synchronous>, transform_indices = @transform_5, window_bounds = array<i64: 32, 32>}, {pipeline_mode = #tpu.pipeline_mode<synchronous>, transform_indices = @transform_6, window_bounds = array<i64: 1, 32>}, {pipeline_mode = #tpu.pipeline_mode<synchronous>, transform_indices = @transform_7, window_bounds = array<i64: 1, 32>}, {transform_indices = @transform_8, window_bounds = array<i64: 1>}, {transform_indices = @transform_9, window_bounds = array<i64: 1, 8>}]} {
    %c0 = arith.constant 0 : index
    %c0_0 = arith.constant 0 : index
    %0 = vector.load %arg1[%c0, %c0_0] : memref<8x32xf32, #tpu.memory_space<vmem>>, vector<8x32xf32>
    %c0_1 = arith.constant 0 : index
    %c0_2 = arith.constant 0 : index
    %1 = vector.load %arg2[%c0_1, %c0_2] : memref<32x32xf32, #tpu.memory_space<vmem>>, vector<32x32xf32>
    %cst = arith.constant dense<0.000000e+00> : vector<8x32xf32>
    %2 = tpu.matmul %0, %1, %cst {dimension_numbers = #tpu.dot_dimension_numbers<[1], [0], [0], [1], [0, 0, 1, 1], [], []>, precision = #tpu.contract_precision<fp32>} : vector<8x32xf32>, vector<32x32xf32>, vector<8x32xf32> -> vector<8x32xf32>
    %c0_3 = arith.constant 0 : index
    %c0_4 = arith.constant 0 : index
    %3 = vector.load %arg3[%c0_3, %c0_4] : memref<1x32xf32, #tpu.memory_space<vmem>>, vector<1x32xf32>
    %4 = vector.broadcast %3 : vector<1x32xf32> to vector<8x32xf32>
    %5 = arith.addf %2, %4 : vector<8x32xf32>
    %cst_5 = arith.constant 0.000000e+00 : f32
    %6 = vector.broadcast %cst_5 : f32 to vector<8x32xf32>
    %7 = arith.maximumf %5, %6 : vector<8x32xf32>
    %c0_6 = arith.constant 0 : index
    %c0_7 = arith.constant 0 : index
    %8 = vector.load %arg4[%c0_6, %c0_7] : memref<32x32xf32, #tpu.memory_space<vmem>>, vector<32x32xf32>
    %cst_8 = arith.constant dense<0.000000e+00> : vector<8x32xf32>
    %9 = tpu.matmul %7, %8, %cst_8 {dimension_numbers = #tpu.dot_dimension_numbers<[1], [0], [0], [1], [0, 0, 1, 1], [], []>, precision = #tpu.contract_precision<fp32>} : vector<8x32xf32>, vector<32x32xf32>, vector<8x32xf32> -> vector<8x32xf32>
    %c0_9 = arith.constant 0 : index
    %c0_10 = arith.constant 0 : index
    %10 = vector.load %arg5[%c0_9, %c0_10] : memref<1x32xf32, #tpu.memory_space<vmem>>, vector<1x32xf32>
    %11 = vector.broadcast %10 : vector<1x32xf32> to vector<8x32xf32>
    %12 = arith.addf %9, %11 : vector<8x32xf32>
    %cst_11 = arith.constant 0.000000e+00 : f32
    %13 = vector.broadcast %cst_11 : f32 to vector<8x32xf32>
    %14 = arith.maximumf %12, %13 : vector<8x32xf32>
    %c0_12 = arith.constant 0 : index
    %c0_13 = arith.constant 0 : index
    %15 = vector.load %arg6[%c0_12, %c0_13] : memref<32x32xf32, #tpu.memory_space<vmem>>, vector<32x32xf32>
    %cst_14 = arith.constant dense<0.000000e+00> : vector<8x32xf32>
    %16 = tpu.matmul %14, %15, %cst_14 {dimension_numbers = #tpu.dot_dimension_numbers<[1], [0], [0], [1], [0, 0, 1, 1], [], []>, precision = #tpu.contract_precision<fp32>} : vector<8x32xf32>, vector<32x32xf32>, vector<8x32xf32> -> vector<8x32xf32>
    %c0_15 = arith.constant 0 : index
    %c0_16 = arith.constant 0 : index
    %17 = vector.load %arg7[%c0_15, %c0_16] : memref<1x32xf32, #tpu.memory_space<vmem>>, vector<1x32xf32>
    %18 = vector.broadcast %17 : vector<1x32xf32> to vector<8x32xf32>
    %19 = arith.addf %16, %18 : vector<8x32xf32>
    %cst_17 = arith.constant 0.000000e+00 : f32
    %20 = vector.broadcast %cst_17 : f32 to vector<8x32xf32>
    %21 = arith.maximumf %19, %20 : vector<8x32xf32>
    %c0_18 = arith.constant 0 : index
    %c0_19 = arith.constant 0 : index
    %22 = vector.load %arg8[%c0_18, %c0_19] : memref<1x32xf32, #tpu.memory_space<vmem>>, vector<1x32xf32>
    %cst_20 = arith.constant dense<0.000000e+00> : vector<1x8xf32>
    %23 = tpu.matmul %22, %21, %cst_20 {dimension_numbers = #tpu.dot_dimension_numbers<[1], [1], [0], [0], [0, 0, 1, 0], [], []>, precision = #tpu.contract_precision<fp32>} : vector<1x32xf32>, vector<8x32xf32>, vector<1x8xf32> -> vector<1x8xf32>
    %c0_21 = arith.constant 0 : index
    %24 = memref.load %arg9[%c0_21] : memref<1xf32, #tpu.memory_space<smem>>
    %25 = vector.broadcast %24 : f32 to vector<1x8xf32>
    %26 = arith.addf %23, %25 : vector<1x8xf32>
    %c0_22 = arith.constant 0 : index
    %c0_23 = arith.constant 0 : index
    %27 = vector.load %arg10[%c0_22, %c0_23] : memref<1x8xf32, #tpu.memory_space<vmem>>, vector<1x8xf32>
    tpu.vector_store %arg10[%c0_22, %c0_23], %26 {strides = array<i32>} : memref<1x8xf32, #tpu.memory_space<vmem>>, vector<1x8xf32>,
    return
  }
  func.func @transform_0(%arg0: i32) -> (i32, i32) {
    %c0_i32 = arith.constant 0 : i32
    %c0_i32_0 = arith.constant 0 : i32
    return %arg0, %c0_i32 : i32, i32
  }
  func.func @transform_1(%arg0: i32) -> (i32, i32) {
    %c0_i32 = arith.constant 0 : i32
    %c0_i32_0 = arith.constant 0 : i32
    %c0_i32_1 = arith.constant 0 : i32
    return %c0_i32, %c0_i32_0 : i32, i32
  }
  func.func @transform_2(%arg0: i32) -> (i32, i32) {
    %c0_i32 = arith.constant 0 : i32
    %c0_i32_0 = arith.constant 0 : i32
    %c0_i32_1 = arith.constant 0 : i32
    return %c0_i32, %c0_i32_0 : i32, i32
  }
  func.func @transform_3(%arg0: i32) -> (i32, i32) {
    %c0_i32 = arith.constant 0 : i32
    %c0_i32_0 = arith.constant 0 : i32
    %c0_i32_1 = arith.constant 0 : i32
    return %c0_i32, %c0_i32_0 : i32, i32
  }
  func.func @transform_4(%arg0: i32) -> (i32, i32) {
    %c0_i32 = arith.constant 0 : i32
    %c0_i32_0 = arith.constant 0 : i32
    %c0_i32_1 = arith.constant 0 : i32
    return %c0_i32, %c0_i32_0 : i32, i32
  }
  func.func @transform_5(%arg0: i32) -> (i32, i32) {
    %c0_i32 = arith.constant 0 : i32
    %c0_i32_0 = arith.constant 0 : i32
    %c0_i32_1 = arith.constant 0 : i32
    return %c0_i32, %c0_i32_0 : i32, i32
  }
  func.func @transform_6(%arg0: i32) -> (i32, i32) {
    %c0_i32 = arith.constant 0 : i32
    %c0_i32_0 = arith.constant 0 : i32
    %c0_i32_1 = arith.constant 0 : i32
    return %c0_i32, %c0_i32_0 : i32, i32
  }
  func.func @transform_7(%arg0: i32) -> (i32, i32) {
    %c0_i32 = arith.constant 0 : i32
    %c0_i32_0 = arith.constant 0 : i32
    %c0_i32_1 = arith.constant 0 : i32
    return %c0_i32, %c0_i32_0 : i32, i32
  }
  func.func @transform_8(%arg0: i32) -> i32 {
    %c0_i32 = arith.constant 0 : i32
    %c0_i32_0 = arith.constant 0 : i32
    return %c0_i32 : i32
  }
  func.func @transform_9(%arg0: i32) -> (i32, i32) {
    %c0_i32 = arith.constant 0 : i32
    %c0_i32_0 = arith.constant 0 : i32
    return %c0_i32, %arg0 : i32, i32
  }
}

</mosaic_0001>

<bundles_post_ra>
// kernel: tpu_custom_call.1
= control target key start
LH: loop header
LB: loop body
LE: loop exit
PB: predicated region body
PF: predicated region fallthrough
CT: control target
= control target key end

     0   :  { %15 = vsyncpa [#allocation4], 0  ;;  %s2892_s0 = inlined_call_operand.hbm [shape: f32[8,32], index: 0, kind: input, shape index: {}]   ;;  %s2893_s1 = inlined_call_operand.hbm [shape: f32[32,32], index: 1, kind: input, shape index: {}]   ;;  %s2894_s2 = inlined_call_operand.vmem [shape: f32[1,32], index: 2, kind: input, shape index: {}]   ;;  %s2895_s3 = inlined_call_operand.hbm [shape: f32[32,32], index: 3, kind: input, shape index: {}]   ;;  %s2896_s4 = inlined_call_operand.vmem [shape: f32[1,32], index: 4, kind: input, shape index: {}]   ;;  %s2897_s5 = inlined_call_operand.hbm [shape: f32[32,32], index: 5, kind: input, shape index: {}]   ;;  %s2898_s6 = inlined_call_operand.vmem [shape: f32[1,32], index: 6, kind: input, shape index: {}]   ;;  %s2899_s7 = inlined_call_operand.vmem [shape: f32[1,32], index: 7, kind: input, shape index: {}]   ;;  %s2900_s8 = inlined_call_operand.<no memory space> [shape: f32[1], index: 8, kind: input, shape index: {}]   ;;  %s2901_s9 = inlined_call_operand.hbm [shape: f32[1,8], index: 9, kind: output, shape index: {}]  }
   0x1   :  { %16 = vsyncpa [#allocation7], 0 }
   0x2   :  { %17 = vsyncpa [#allocation10], 0 }
   0x3   :  { %18 = vsyncpa [#allocation5], 0  ;;  %s2513_s30 = smov [#allocation6]  }
   0x4   :  { %s34_s10 = sshll.u32 %s2513_s30, 4  ;;  %s35_s10 = int_to_ptr.vmem [resolvable:$true] %s34_s10 }
   0x5   :  { %s2413_s11 = scalar_lea.vmem %s35_s10, 512  ;;  %p2418_p1 = scmp.lt.s32.totalorder %s35_s10, %s35_s10 }
   0x6   :  { %p2414_p0 = scmp.ne.s32.totalorder %s35_s10, %s2413_s11  ;;  %p2419_p2 = scmp.lt.s32.totalorder %s2413_s11, %s2413_s11 }
   0x8   :  { %p2420_p3 = por %p2419_p2, %p2418_p1 }
   0xa   :  { %p2421_p4 = pnand %p2420_p3, %p2414_p0 }
   0xc   :  { %2424 = shalt.err (!%p2421_p4)
}
   0xd   :  { %s2514_s12 = smov 128   ;;  %s2515_s13 = smov 8  }
   0xe   :  { %40 = dma.hbm_to_vmem [thread:$0]  %s2893_s1, 512, %s35_s10, [#allocation7], %s2514_s12, %s2514_s12, %s2515_s13  }
   0xf   :  { %s2516_s16 = smov [#allocation3]   ;;  %s2517_s18 = smov [#allocation8]  }
  0x10   :  { %s25_s17 = sshll.u32 %s2516_s16, 4  ;;  %s48_s19 = sshll.u32 %s2517_s18, 4  ;;  %s26_s17 = int_to_ptr.vmem [resolvable:$true] %s25_s17  ;;  %s49_s19 = int_to_ptr.vmem [resolvable:$true] %s48_s19 }
  0x11   :  { %s2433_s20 = scalar_lea.vmem %s26_s17, 128  ;;  %p2438_p6 = scmp.lt.s32.totalorder %s26_s17, %s26_s17 }
  0x12   :  { %p2434_p5 = scmp.ne.s32.totalorder %s26_s17, %s2433_s20  ;;  %p2439_p7 = scmp.lt.s32.totalorder %s2433_s20, %s2433_s20 }
  0x14   :  { %p2440_p8 = por %p2439_p7, %p2438_p6 }
  0x16   :  { %p2441_p9 = pnand %p2440_p8, %p2434_p5 }
  0x18   :  { %2444 = shalt.err (!%p2441_p9)
}
  0x19   :  { %28 = dma.hbm_to_vmem [thread:$0]  %s2892_s0, 128, %s26_s17, [#allocation4]  }
  0x1a   :  { %s2453_s23 = scalar_lea.vmem %s49_s19, 512  ;;  %p2458_p11 = scmp.lt.s32.totalorder %s49_s19, %s49_s19 }
  0x1b   :  { %p2454_p10 = scmp.ne.s32.totalorder %s49_s19, %s2453_s23  ;;  %p2459_p12 = scmp.lt.s32.totalorder %s2453_s23, %s2453_s23 }
  0x1d   :  { %p2460_p13 = por %p2459_p12, %p2458_p11 }
  0x1f   :  { %p2461_p0 = pnand %p2460_p13, %p2454_p10 }
  0x21   :  { %2464 = shalt.err (!%p2461_p0)
}
  0x22   :  { %54 = dma.hbm_to_vmem [thread:$0]  %s2895_s3, 512, %s49_s19, [#allocation7], %s2514_s12, %s2514_s12, %s2515_s13  }
  0x23   :  { %s2518_s25 = smov [#allocation9]  }
  0x24   :  { %s62_s26 = sshll.u32 %s2518_s25, 4  ;;  %s63_s26 = int_to_ptr.vmem [resolvable:$true] %s62_s26 }
  0x25   :  { %s2473_s27 = scalar_lea.vmem %s63_s26, 512  ;;  %p2478_p2 = scmp.lt.s32.totalorder %s63_s26, %s63_s26 }
  0x26   :  { %p2474_p1 = scmp.ne.s32.totalorder %s63_s26, %s2473_s27  ;;  %p2479_p3 = scmp.lt.s32.totalorder %s2473_s27, %s2473_s27 }
  0x28   :  { %p2480_p4 = por %p2479_p3, %p2478_p2 }
  0x2a   :  { %p2481_p5 = pnand %p2480_p4, %p2474_p1 }
  0x2c   :  { %2484 = shalt.err (!%p2481_p5)
}
  0x2d   :  { %68 = dma.hbm_to_vmem [thread:$0]  %s2897_s5, 512, %s63_s26, [#allocation10], %s2514_s12, %s2514_s12, %s2515_s13  }
  0x2e   :  { %2505 = dma.done.wait [#allocation4], 128  }
  0x2f   :  { %2506 = vsyncadd [#allocation4], 4294967168 }
  0x30   :  { %2507 = dma.done.wait [#allocation7], 1024  }
  0x31   :  { %2508 = vsyncadd [#allocation7], 4294966272 }
  0x32   :  { %2509 = dma.done.wait [#allocation10], 512  }
  0x33   :  { %2510 = vsyncadd [#allocation10], 4294966784  ;;  %v2519_v0 = vmov 0.0   ;;  %vm2520_vm0 = vmmov 0   ;;  %vm99_vm1 = vcmask 261120   ;;  %v91_v1 = vld [vmem:[#allocation6 + $0x18] sm:$0xff] }
  0x34   :  { %2168 = vmatprep.subr.mxu0 %v2519_v0  ;;  %2179 = vmatprep.subr.mxu1 %v2519_v0  ;;  %v90_v2 = vld [vmem:[#allocation6 + $0x10] sm:$0xff]  ;;  %v89_v3 = vld [vmem:[#allocation6 + $0x8] sm:$0xff]  ;;  %v2599_v4 = vand.u32 4294901760, %v91_v1  ;;  %v88_v7 = vld [vmem:[#allocation6] sm:$0xff]  ;;  %s2521_s12 = smov [#allocation11]   ;;  %vm2044_vm2 = vcmask 57344  }
  0x35   :  { %2176 = vmatprep.mubr.msk.f32.mxu0 %vm2520_vm0, %v2519_v0  ;;  %2187 = vmatprep.mubr.msk.f32.mxu1 %vm2520_vm0, %v2519_v0  ;;  %v2601_v5 = vand.u32 4294901760, %v90_v2  ;;  %v2603_v6 = vand.u32 4294901760, %v89_v3  ;;  %v87_v8 = vld [vmem:[#allocation3] sm:$0xff]  ;;  %v2605_v9 = vand.u32 4294901760, %v88_v7  ;;  %v591_v34 = vld [vmem:[#allocation8 + $0x10] sm:$0xff]  ;;  %v590_v37 = vld [vmem:[#allocation8 + $0x8] sm:$0xff] }
  0x36   :  { %v101_v10 = vsel %vm99_vm1, %v87_v8, 0  ;;  %2169 = vmatpush3.msra.mxu0 %v2599_v4  ;;  %v208_v11 = vsub.f32 %v91_v1, %v2599_v4  ;;  %v592_v32 = vld [vmem:[#allocation8 + $0x18] sm:$0xff]  ;;  %v2671_v36 = vand.u32 4294901760, %v591_v34  ;;  %v2679_v40 = vand.u32 4294901760, %v590_v37  ;;  %v589_v41 = vld [vmem:[#allocation8] sm:$0xff]  ;;  %s2052_s13 = sshll.u32 %s2521_s12, 4  ;;  %s2053_s13 = int_to_ptr.vmem [resolvable:$true] %s2052_s13 }
  0x37   :  { %v2610_v12 = vand.u32 4294901760, %v101_v10  ;;  %v215_v13 = vsub.f32 %v90_v2, %v2601_v5  ;;  %v222_v14 = vsub.f32 %v89_v3, %v2603_v6  ;;  %2170 = vmatprep.subr.mxu0 %v2519_v0  ;;  %v229_v15 = vsub.f32 %v88_v7, %v2605_v9  ;;  %v2063_v59 = vld [vmem:[%s2894_s2] ss:$0 sm:$0xff]  ;;  %s2489_s14 = scalar_lea.vmem %s2053_s13, 32  ;;  %p2490_p7 = scmp.lt.s32.totalorder %s2053_s13, %s2053_s13 }
  0x38   :  { %2171 = vmatpush3.msra.mxu0 %v2601_v5  ;;  %v209_v16 = vand.u32 4294901760, %v208_v11  ;;  %v2666_v33 = vand.u32 4294901760, %v592_v32  ;;  %v2677_v39 = vsub.f32 %v591_v34, %v2671_v36  ;;  %v2688_v44 = vsub.f32 %v590_v37, %v2679_v40 }
  0x39   :  { %v173_v17 = vsub.f32 %v101_v10, %v2610_v12  ;;  %v216_v18 = vand.u32 4294901760, %v215_v13  ;;  %v223_v19 = vand.u32 4294901760, %v222_v14  ;;  %2172 = vmatprep.subr.mxu0 %v2519_v0  ;;  %v230_v20 = vand.u32 4294901760, %v229_v15 }
  0x3a   :  { %2173 = vmatpush3.msra.mxu0 %v2603_v6  ;;  %v210_v21 = vsub.f32 %v208_v11, %v209_v16  ;;  %v2669_v35 = vsub.f32 %v592_v32, %v2666_v33  ;;  %v716_v43 = vand.u32 4294901760, %v2677_v39  ;;  %v2690_v45 = vand.u32 4294901760, %v589_v41 }
  0x3b   :  { %v174_v22 = vand.u32 4294901760, %v173_v17  ;;  %v217_v23 = vsub.f32 %v215_v13, %v216_v18  ;;  %v224_v24 = vsub.f32 %v222_v14, %v223_v19  ;;  %2174 = vmatprep.subr.mxu0 %v2519_v0  ;;  %v231_v28 = vsub.f32 %v229_v15, %v230_v20 }
  0x3c   :  { %2175 = vmatpush3.msra.mxu0 %v2605_v9  ;;  %v211_v25 = vand.u32 4294901760, %v210_v21  ;;  %v709_v38 = vand.u32 4294901760, %v2669_v35  ;;  %v717_v47 = vsub.f32 %v2677_v39, %v716_v43  ;;  %v723_v48 = vand.u32 4294901760, %v2688_v44  ;;  %v1091_v21 = vld [vmem:[#allocation9 + $0x10] sm:$0xff] }
  0x3d   :  { %v175_v26 = vsub.f32 %v173_v17, %v174_v22  ;;  %v218_v27 = vand.u32 4294901760, %v217_v23  ;;  %2190 = vmatprep.subr.mxu0 %v2519_v0  ;;  %v225_v30 = vand.u32 4294901760, %v224_v24  ;;  %v232_v31 = vand.u32 4294901760, %v231_v28  ;;  %v1090_v24 = vld [vmem:[#allocation9 + $0x8] sm:$0xff]  ;;  %v1089_v28 = vld [vmem:[#allocation9] sm:$0xff] }
  0x3e   :  { %2180 = vmatpush3.msra.mxu1 %v211_v25  ;;  %v710_v42 = vsub.f32 %v2669_v35, %v709_v38  ;;  %v2699_v49 = vsub.f32 %v589_v41, %v2690_v45  ;;  %v718_v50 = vand.u32 4294901760, %v717_v47  ;;  %v724_v51 = vsub.f32 %v2688_v44, %v723_v48 }
  0x3f   :  { %v176_v29 = vand.u32 4294901760, %v175_v26  ;;  %2181 = vmatprep.subr.mxu1 %v2519_v0  ;;  %v2771_v23 = vand.u32 4294901760, %v1091_v21  ;;  %v2790_v32 = vand.u32 4294901760, %v1089_v28 }
  0x40   :  { %2182 = vmatpush3.msra.mxu1 %v218_v27  ;;  %v711_v46 = vand.u32 4294901760, %v710_v42  ;;  %v730_v52 = vand.u32 4294901760, %v2699_v49  ;;  %v725_v53 = vand.u32 4294901760, %v724_v51  ;;  %v2779_v27 = vand.u32 4294901760, %v1090_v24 }
  0x41   :  { %2177 = vmatmul.mubr.f32.vlgmr.msra.gmra.mxu0 %v176_v29  ;;  %2183 = vmatprep.subr.mxu1 %v2519_v0  ;;  %v2777_v26 = vsub.f32 %v1091_v21, %v2771_v23 }
  0x42   :  { %2191 = vmatpush3.msra.mxu0 %v208_v11  ;;  %2184 = vmatpush3.msra.mxu1 %v225_v30  ;;  %v731_v54 = vsub.f32 %v2699_v49, %v730_v52 }
  0x43   :  { %2192 = vmatprep.subr.mxu0 %v2519_v0  ;;  %2185 = vmatprep.subr.mxu1 %v2519_v0  ;;  %v1216_v30 = vand.u32 4294901760, %v2777_v26 }
  0x44   :  { %2193 = vmatpush3.msra.mxu0 %v215_v13  ;;  %2186 = vmatpush3.msra.mxu1 %v232_v31  ;;  %v732_v55 = vand.u32 4294901760, %v731_v54  ;;  %v2788_v31 = vsub.f32 %v1090_v24, %v2779_v27 }
  0x45   :  { %2194 = vmatprep.subr.mxu0 %v2519_v0  ;;  %2188 = vmatmul.mubr.f32.vlgmr.msra.gmra.mxu1 %v2610_v12  ;;  %v1217_v34 = vsub.f32 %v2777_v26, %v1216_v30 }
  0x46   :  { %2195 = vmatpush3.msra.mxu0 %v222_v14  ;;  %2201 = vmatprep.subr.mxu1 %v2519_v0 }
  0x47   :  { %2196 = vmatprep.subr.mxu0 %v2519_v0  ;;  %2202 = vmatpush3.msra.mxu1 %v2599_v4  ;;  %v1218_v37 = vand.u32 4294901760, %v1217_v34 }
  0x48   :  { %2197 = vmatpush3.msra.mxu0 %v229_v15  ;;  %2198 = vmatprep.mubr.msk.f32.mxu0 %vm2520_vm0, %v2519_v0 }
  0x49   :  { %2203 = vmatprep.subr.mxu1 %v2519_v0  ;;  %2212 = vmatprep.subr.mxu0 %v2519_v0 }
  0x4a   :  { %2199 = vmatmul.mubr.f32.vlgmr.msra.gmra.mxu0 %v173_v17  ;;  %2204 = vmatpush3.msra.mxu1 %v2601_v5 }
  0x4b   :  { %2213 = vmatpush3.msra.mxu0 %v209_v16  ;;  %2205 = vmatprep.subr.mxu1 %v2519_v0 }
  0x4c   :  { %2214 = vmatprep.subr.mxu0 %v2519_v0  ;;  %2206 = vmatpush3.msra.mxu1 %v2603_v6 }
  0x4d   :  { %2215 = vmatpush3.msra.mxu0 %v216_v18  ;;  %2207 = vmatprep.subr.mxu1 %v2519_v0 }
  0x4e   :  { %2216 = vmatprep.subr.mxu0 %v2519_v0  ;;  %2208 = vmatpush3.msra.mxu1 %v2605_v9 }
  0x4f   :  { %2209 = vmatprep.mubr.msk.f32.mxu1 %vm2520_vm0, %v2519_v0  ;;  %2217 = vmatpush3.msra.mxu0 %v223_v19  ;;  %v1092_v19 = vld [vmem:[#allocation9 + $0x18] sm:$0xff] }
  0x50   :  { %2210 = vmatmul.mubr.f32.vlgmr.msra.gmra.mxu1 %v174_v22  ;;  %2218 = vmatprep.subr.mxu0 %v2519_v0 }
  0x51   :  { %2223 = vmatprep.subr.mxu1 %v2519_v0  ;;  %2219 = vmatpush3.msra.mxu0 %v230_v20  ;;  %v2766_v20 = vand.u32 4294901760, %v1092_v19 }
  0x52   :  { %2220 = vmatprep.mubr.msk.f32.mxu0 %vm2520_vm0, %v2519_v0  ;;  %2224 = vmatpush3.msra.mxu1 %v2599_v4 }
  0x53   :  { %2221 = vmatmul.mubr.f32.vlgmr.msra.gmra.mxu0 %v2610_v12  ;;  %2225 = vmatprep.subr.mxu1 %v2519_v0  ;;  %v2769_v22 = vsub.f32 %v1092_v19, %v2766_v20 }
  0x54   :  { %2231 = vmatprep.mubr.msk.f32.mxu1 %vm2520_vm0, %v2519_v0  ;;  %2226 = vmatpush3.msra.mxu1 %v2601_v5 }
  0x55   :  { %2234 = vmatprep.subr.mxu0 %v2519_v0  ;;  %2227 = vmatprep.subr.mxu1 %v2519_v0  ;;  %v1209_v25 = vand.u32 4294901760, %v2769_v22 }
  0x56   :  { %2242 = vmatprep.mubr.msk.f32.mxu0 %vm2520_vm0, %v2519_v0  ;;  %2228 = vmatpush3.msra.mxu1 %v2603_v6 }
  0x57   :  { %2229 = vmatprep.subr.mxu1 %v2519_v0  ;;  %2235 = vmatpush3.msra.mxu0 %v2666_v33  ;;  %v1210_v29 = vsub.f32 %v2769_v22, %v1209_v25 }
  0x58   :  { %2230 = vmatpush3.msra.mxu1 %v2605_v9  ;;  %2236 = vmatprep.subr.mxu0 %v2519_v0 }
  0x59   :  { %2232 = vmatmul.mubr.f32.vlgmr.msra.gmra.mxu1 %v2610_v12  ;;  %2245 = vmatprep.subr.mxu1 %v2519_v0 }
  0x5a   :  { %2253 = vmatprep.mubr.msk.f32.mxu1 %vm2520_vm0, %v2519_v0  ;;  %2237 = vmatpush3.msra.mxu0 %v2671_v36 }
  0x5b   :  { %2238 = vmatprep.subr.mxu0 %v2519_v0  ;;  %2246 = vmatpush3.msra.mxu1 %v711_v46 }
  0x5c   :  { %2239 = vmatpush3.msra.mxu0 %v2679_v40  ;;  %2247 = vmatprep.subr.mxu1 %v2519_v0 }
  0x5d   :  { %2240 = vmatprep.subr.mxu0 %v2519_v0  ;;  %2248 = vmatpush3.msra.mxu1 %v718_v50 }
  0x5e   :  { %2241 = vmatpush3.msra.mxu0 %v2690_v45  ;;  %2249 = vmatprep.subr.mxu1 %v2519_v0 }
  0x5f   :  { %2256 = vmatprep.subr.mxu0 %v2519_v0  ;;  %2250 = vmatpush3.msra.mxu1 %v725_v53 }
  0x60   :  { %2251 = vmatprep.subr.mxu1 %v2519_v0 }
  0x61   :  { %2252 = vmatpush3.msra.mxu1 %v732_v55 }
  0x62   :  { %2267 = vmatprep.subr.mxu1 %v2519_v0 }
 0x101   :  { %v178_v56 = vpop.f32.mrf.mxu0 }
 0x102   :  { %v179_v62 = vadd.f32 %v2063_v59, %v178_v56 }
 0x103   :  { %v2178_v57 = vpop.f32.mrf.mxu0 }
 0x105   :  { %v269_v58 = vpop.f32.mrf.mxu1 }
 0x106   :  { %v270_v1 = vadd.f32 %v269_v58, %v179_v62 }
 0x107   :  { %v2189_v60 = vpop.f32.mrf.mxu1 }
 0x10a   :  { %v349_v61 = vpop.f32.mrf.mxu0 }
 0x10b   :  { %v350_v4 = vadd.f32 %v349_v61, %v270_v1 }
 0x10c   :  { %v2200_v63 = vpop.f32.mrf.mxu0 }
 0x110   :  { %v426_v2 = vpop.f32.mrf.mxu1 }
 0x111   :  { %v427_v6 = vadd.f32 %v426_v2, %v350_v4 }
 0x112   :  { %v2211_v3 = vpop.f32.mrf.mxu1 }
 0x113   :  { %v509_v5 = vpop.f32.mrf.mxu0 }
 0x114   :  { %v510_v8 = vadd.f32 %v509_v5, %v427_v6 }
 0x115   :  { %v2222_v7 = vpop.f32.mrf.mxu0 }
 0x119   :  { %v584_v9 = vpop.f32.mrf.mxu1 }
 0x11a   :  { %v585_v10 = vadd.f32 %v584_v9, %v510_v8 }
 0x11b   :  { %v2233_v11 = vpop.f32.mrf.mxu1 }
 0x11c   :  { %v588_v12 = vmax.f32 %v585_v10, 0.0 }
 0x11e   :  { %v601_v13 = vsel %vm99_vm1, %v588_v12, 0  ;;  %v2065_v12 = vld [vmem:[%s2898_s6] ss:$0 sm:$0xff] }
 0x11f   :  { %v672_v14 = vand.u32 4294901760, %v601_v13 }
 0x121   :  { %v673_v15 = vsub.f32 %v601_v13, %v672_v14  ;;  %2254 = vmatmul.mubr.f32.vlgmr.msra.gmra.mxu1 %v672_v14  ;;  %v1589_v13 = vld [vmem:[%s2899_s7] sm:$0x1] }
 0x122   :  { %2268 = vmatpush3.msra.mxu1 %v2666_v33  ;;  %2275 = vmatprep.mubr.msk.f32.mxu1 %vm2520_vm0, %v2519_v0 }
 0x123   :  { %2269 = vmatprep.subr.mxu1 %v2519_v0  ;;  %v674_v16 = vand.u32 4294901760, %v673_v15 }
 0x124   :  { %2270 = vmatpush3.msra.mxu1 %v2671_v36 }
 0x125   :  { %2271 = vmatprep.subr.mxu1 %v2519_v0  ;;  %v675_v17 = vsub.f32 %v673_v15, %v674_v16 }
 0x126   :  { %2272 = vmatpush3.msra.mxu1 %v2679_v40 }
 0x127   :  { %2273 = vmatprep.subr.mxu1 %v2519_v0  ;;  %v676_v18 = vand.u32 4294901760, %v675_v17 }
 0x128   :  { %2274 = vmatpush3.msra.mxu1 %v2690_v45 }
 0x129   :  { %2276 = vmatmul.mubr.f32.vlgmr.msra.gmra.mxu1 %v674_v16  ;;  %2289 = vmatprep.subr.mxu1 %v2519_v0 }
 0x12a   :  { %2243 = vmatmul.mubr.f32.vlgmr.msra.gmra.mxu0 %v676_v18  ;;  %2290 = vmatpush3.msra.mxu1 %v2666_v33  ;;  %v1211_v33 = vand.u32 4294901760, %v1210_v29 }
 0x12b   :  { %2257 = vmatpush3.msra.mxu0 %v2669_v35  ;;  %2291 = vmatprep.subr.mxu1 %v2519_v0  ;;  %v1223_v35 = vand.u32 4294901760, %v2788_v31 }
 0x12c   :  { %2258 = vmatprep.subr.mxu0 %v2519_v0  ;;  %2292 = vmatpush3.msra.mxu1 %v2671_v36  ;;  %v2799_v36 = vsub.f32 %v1089_v28, %v2790_v32 }
 0x12d   :  { %2259 = vmatpush3.msra.mxu0 %v2677_v39  ;;  %2293 = vmatprep.subr.mxu1 %v2519_v0 }
 0x12e   :  { %2260 = vmatprep.subr.mxu0 %v2519_v0  ;;  %2294 = vmatpush3.msra.mxu1 %v2679_v40  ;;  %v1230_v39 = vand.u32 4294901760, %v2799_v36 }
 0x12f   :  { %2261 = vmatpush3.msra.mxu0 %v2688_v44  ;;  %2295 = vmatprep.subr.mxu1 %v2519_v0 }
 0x130   :  { %2262 = vmatprep.subr.mxu0 %v2519_v0  ;;  %2264 = vmatprep.mubr.msk.f32.mxu0 %vm2520_vm0, %v2519_v0  ;;  %v1231_v41 = vsub.f32 %v2799_v36, %v1230_v39 }
 0x131   :  { %2263 = vmatpush3.msra.mxu0 %v2699_v49  ;;  %2296 = vmatpush3.msra.mxu1 %v2690_v45  ;;  %v2064_v49 = vld [vmem:[%s2896_s4] ss:$0 sm:$0xff] }
 0x132   :  { %2297 = vmatprep.mubr.msk.f32.mxu1 %vm2520_vm0, %v2519_v0  ;;  %2265 = vmatmul.mubr.f32.vlgmr.msra.gmra.mxu0 %v673_v15  ;;  %v1232_v42 = vand.u32 4294901760, %v1231_v41  ;;  %v1593_v15 = vsel %vm99_vm1, %v1589_v13, 0 }
 0x133   :  { %2278 = vmatprep.subr.mxu0 %v2519_v0  ;;  %2298 = vmatmul.mubr.f32.vlgmr.msra.gmra.mxu1 %v672_v14 }
 0x134   :  { %2279 = vmatpush3.msra.mxu0 %v709_v38  ;;  %2286 = vmatprep.mubr.msk.f32.mxu0 %vm2520_vm0, %v2519_v0  ;;  %v1224_v38 = vsub.f32 %v2788_v31, %v1223_v35 }
 0x135   :  { %2280 = vmatprep.subr.mxu0 %v2519_v0  ;;  %2311 = vmatprep.subr.mxu1 %v2519_v0 }
 0x136   :  { %2281 = vmatpush3.msra.mxu0 %v716_v43  ;;  %2319 = vmatprep.mubr.msk.f32.mxu1 %vm2520_vm0, %v2519_v0  ;;  %v1225_v40 = vand.u32 4294901760, %v1224_v38 }
 0x137   :  { %2282 = vmatprep.subr.mxu0 %v2519_v0  ;;  %2312 = vmatpush3.msra.mxu1 %v1211_v33 }
 0x138   :  { %2283 = vmatpush3.msra.mxu0 %v723_v48  ;;  %2313 = vmatprep.subr.mxu1 %v2519_v0 }
 0x139   :  { %2284 = vmatprep.subr.mxu0 %v2519_v0  ;;  %2314 = vmatpush3.msra.mxu1 %v1218_v37 }
 0x13a   :  { %2285 = vmatpush3.msra.mxu0 %v730_v52  ;;  %2315 = vmatprep.subr.mxu1 %v2519_v0 }
 0x13b   :  { %2287 = vmatmul.mubr.f32.vlgmr.msra.gmra.mxu0 %v672_v14  ;;  %2300 = vmatprep.subr.mxu0 %v2519_v0 }
 0x13c   :  { %2308 = vmatprep.mubr.msk.f32.mxu0 %vm2520_vm0, %v2519_v0  ;;  %2301 = vmatpush3.msra.mxu0 %v2766_v20 }
 0x13d   :  { %2302 = vmatprep.subr.mxu0 %v2519_v0  ;;  %2316 = vmatpush3.msra.mxu1 %v1225_v40  ;;  %v1591_v40 = vstv %s2900_s8  ;;  %s2485_s8 = scalar_lea.vmem %s2053_s13, 16 }
 0x13e   :  { %2303 = vmatpush3.msra.mxu0 %v2771_v23  ;;  %2317 = vmatprep.subr.mxu1 %v2519_v0  ;;  %p2486_p6 = scmp.ne.s32.totalorder %s2053_s13, %s2485_s8  ;;  %p2491_p8 = scmp.lt.s32.totalorder %s2489_s14, %s2485_s8 }
 0x13f   :  { %2304 = vmatprep.subr.mxu0 %v2519_v0  ;;  %2318 = vmatpush3.msra.mxu1 %v1232_v42 }
 0x140   :  { %2305 = vmatpush3.msra.mxu0 %v2779_v27  ;;  %2333 = vmatprep.subr.mxu1 %v2519_v0  ;;  %p2492_p9 = por %p2491_p8, %p2490_p7 }
 0x141   :  { %2306 = vmatprep.subr.mxu0 %v2519_v0 }
 0x142   :  { %2307 = vmatpush3.msra.mxu0 %v2790_v32  ;;  %p2493_p10 = pnand %p2492_p9, %p2486_p6 }
 0x143   :  { %2322 = vmatprep.subr.mxu0 %v2519_v0 }
 0x1e1   :  { %v769_v43 = vpop.f32.mrf.mxu1 }
 0x1e3   :  { %v2255_v44 = vpop.f32.mrf.mxu1 }
 0x1e9   :  { %v926_v45 = vpop.f32.mrf.mxu1 }
 0x1ea   :  { %v678_v46 = vpop.f32.mrf.mxu0 }
 0x1eb   :  { %v2277_v47 = vpop.f32.mrf.mxu1  ;;  %v679_v50 = vadd.f32 %v2064_v49, %v678_v46 }
 0x1ec   :  { %v2244_v48 = vpop.f32.mrf.mxu0 }
 0x1ed   :  { %v770_v53 = vadd.f32 %v769_v43, %v679_v50 }
 0x1f2   :  { %v849_v51 = vpop.f32.mrf.mxu0 }
 0x1f3   :  { %v1084_v52 = vpop.f32.mrf.mxu1  ;;  %v850_v56 = vadd.f32 %v849_v51, %v770_v53 }
 0x1f4   :  { %v2266_v54 = vpop.f32.mrf.mxu0 }
 0x1f5   :  { %v2299_v55 = vpop.f32.mrf.mxu1  ;;  %v927_v57 = vadd.f32 %v926_v45, %v850_v56 }
 0x1fb   :  { %v1009_v58 = vpop.f32.mrf.mxu0 }
 0x1fc   :  { %v1010_v59 = vadd.f32 %v1009_v58, %v927_v57 }
 0x1fd   :  { %v2288_v60 = vpop.f32.mrf.mxu0 }
 0x1fe   :  { %v1085_v61 = vadd.f32 %v1084_v52, %v1010_v59 }
 0x200   :  { %v1088_v62 = vmax.f32 %v1085_v61, 0.0 }
 0x202   :  { %v1101_v63 = vsel %vm99_vm1, %v1088_v62, 0 }
 0x203   :  { %v1172_v1 = vand.u32 4294901760, %v1101_v63 }
 0x205   :  { %v1173_v2 = vsub.f32 %v1101_v63, %v1172_v1  ;;  %2320 = vmatmul.mubr.f32.vlgmr.msra.gmra.mxu1 %v1172_v1 }
 0x206   :  { %2334 = vmatpush3.msra.mxu1 %v2766_v20  ;;  %2341 = vmatprep.mubr.msk.f32.mxu1 %vm2520_vm0, %v2519_v0 }
 0x207   :  { %2335 = vmatprep.subr.mxu1 %v2519_v0  ;;  %v1174_v3 = vand.u32 4294901760, %v1173_v2 }
 0x208   :  { %2336 = vmatpush3.msra.mxu1 %v2771_v23 }
 0x209   :  { %2337 = vmatprep.subr.mxu1 %v2519_v0  ;;  %v1175_v4 = vsub.f32 %v1173_v2, %v1174_v3 }
 0x20a   :  { %2338 = vmatpush3.msra.mxu1 %v2779_v27 }
 0x20b   :  { %2339 = vmatprep.subr.mxu1 %v2519_v0  ;;  %v1176_v5 = vand.u32 4294901760, %v1175_v4 }
 0x20c   :  { %2340 = vmatpush3.msra.mxu1 %v2790_v32 }
 0x20d   :  { %2342 = vmatmul.mubr.f32.vlgmr.msra.gmra.mxu1 %v1174_v3  ;;  %2355 = vmatprep.subr.mxu1 %v2519_v0 }
 0x20e   :  { %2309 = vmatmul.mubr.f32.vlgmr.msra.gmra.mxu0 %v1176_v5  ;;  %2356 = vmatpush3.msra.mxu1 %v2766_v20  ;;  %v1664_v20 = vand.u32 4294901760, %v1593_v15 }
 0x20f   :  { %2323 = vmatpush3.msra.mxu0 %v2769_v22  ;;  %2357 = vmatprep.subr.mxu1 %v2519_v0 }
 0x210   :  { %2324 = vmatprep.subr.mxu0 %v2519_v0  ;;  %2358 = vmatpush3.msra.mxu1 %v2771_v23  ;;  %v1665_v23 = vsub.f32 %v1593_v15, %v1664_v20 }
 0x211   :  { %2325 = vmatpush3.msra.mxu0 %v2777_v26  ;;  %2359 = vmatprep.subr.mxu1 %v2519_v0 }
 0x212   :  { %2326 = vmatprep.subr.mxu0 %v2519_v0  ;;  %2360 = vmatpush3.msra.mxu1 %v2779_v27  ;;  %v1666_v27 = vand.u32 4294901760, %v1665_v23 }
 0x213   :  { %2327 = vmatpush3.msra.mxu0 %v2788_v31  ;;  %2361 = vmatprep.subr.mxu1 %v2519_v0 }
 0x214   :  { %2328 = vmatprep.subr.mxu0 %v2519_v0  ;;  %2330 = vmatprep.mubr.msk.f32.mxu0 %vm2520_vm0, %v2519_v0  ;;  %v1667_v31 = vsub.f32 %v1665_v23, %v1666_v27 }
 0x215   :  { %2329 = vmatpush3.msra.mxu0 %v2799_v36  ;;  %2362 = vmatpush3.msra.mxu1 %v2790_v32 }
 0x216   :  { %2363 = vmatprep.mubr.msk.f32.mxu1 %vm2520_vm0, %v2519_v0  ;;  %2331 = vmatmul.mubr.f32.vlgmr.msra.gmra.mxu0 %v1173_v2  ;;  %v1668_v34 = vand.u32 4294901760, %v1667_v31 }
 0x217   :  { %2344 = vmatprep.subr.mxu0 %v2519_v0  ;;  %2364 = vmatmul.mubr.f32.vlgmr.msra.gmra.mxu1 %v1172_v1 }
 0x218   :  { %2345 = vmatpush3.msra.mxu0 %v1209_v25  ;;  %2352 = vmatprep.mubr.msk.f32.mxu0 %vm2520_vm0, %v2519_v0 }
 0x219   :  { %2346 = vmatprep.subr.mxu0 %v2519_v0  ;;  %2371 = vmatprep.subr.mxu1 %v2519_v0 }
 0x21a   :  { %2347 = vmatpush3.msra.mxu0 %v1216_v30  ;;  %2373 = vmatprep.mubr.msk.f32.mxu1 %vm2520_vm0, %v2519_v0 }
 0x21b   :  { %2348 = vmatprep.subr.mxu0 %v2519_v0 }
 0x21c   :  { %2349 = vmatpush3.msra.mxu0 %v1223_v35 }
 0x21d   :  { %2350 = vmatprep.subr.mxu0 %v2519_v0 }
 0x21e   :  { %2351 = vmatpush3.msra.mxu0 %v1230_v39 }
 0x21f   :  { %2353 = vmatmul.mubr.f32.vlgmr.msra.gmra.mxu0 %v1172_v1  ;;  %2366 = vmatprep.subr.mxu0 %v2519_v0 }
 0x220   :  { %2368 = vmatprep.mubr.msk.f32.mxu0 %vm2520_vm0, %v2519_v0 }
 0x2c5   :  { %v1269_v6 = vpop.f32.mrf.mxu1 }
 0x2c7   :  { %v2321_v7 = vpop.f32.mrf.mxu1 }
 0x2cd   :  { %v1426_v8 = vpop.f32.mrf.mxu1 }
 0x2ce   :  { %v1178_v9 = vpop.f32.mrf.mxu0 }
 0x2cf   :  { %v2343_v10 = vpop.f32.mrf.mxu1  ;;  %v1179_v14 = vadd.f32 %v2065_v12, %v1178_v9 }
 0x2d0   :  { %v2310_v11 = vpop.f32.mrf.mxu0 }
 0x2d1   :  { %v1270_v18 = vadd.f32 %v1269_v6, %v1179_v14 }
 0x2d6   :  { %v1349_v16 = vpop.f32.mrf.mxu0 }
 0x2d7   :  { %v1584_v17 = vpop.f32.mrf.mxu1  ;;  %v1350_v22 = vadd.f32 %v1349_v16, %v1270_v18 }
 0x2d8   :  { %v2332_v19 = vpop.f32.mrf.mxu0 }
 0x2d9   :  { %v2365_v21 = vpop.f32.mrf.mxu1  ;;  %v1427_v24 = vadd.f32 %v1426_v8, %v1350_v22 }
 0x2df   :  { %v1509_v25 = vpop.f32.mrf.mxu0 }
 0x2e0   :  { %v1510_v26 = vadd.f32 %v1509_v25, %v1427_v24 }
 0x2e1   :  { %v2354_v28 = vpop.f32.mrf.mxu0 }
 0x2e2   :  { %v1585_v29 = vadd.f32 %v1584_v17, %v1510_v26 }
 0x2e4   :  { %v1588_v30 = vmax.f32 %v1585_v29, 0.0 }
 0x2e6   :  { %v1596_v32 = vsel %vm99_vm1, %v1588_v30, 0 }
 0x2e7   :  { %v1629_v33 = vand.u32 4294901760, %v1596_v32 }
 0x2e9   :  { %v1706_v35 = vsub.f32 %v1596_v32, %v1629_v33  ;;  %2367 = vmatpush3.xpose.msra.mxu0 %v1629_v33 }
 0x2ea   :  { %2376 = vmatprep.subr.mxu0 %v2519_v0 }
 0x2eb   :  { %v1707_v36 = vand.u32 4294901760, %v1706_v35 }
 0x2ec   :  { %2369 = vmatmul.mubr.f32.vlgmr.msra.gmra.mxu0 %v1668_v34 }
 0x2ed   :  { %2377 = vmatpush3.xpose.msra.mxu0 %v1706_v35  ;;  %2378 = vmatprep.mubr.msk.f32.mxu0 %vm2520_vm0, %v2519_v0  ;;  %v1708_v37 = vsub.f32 %v1706_v35, %v1707_v36 }
 0x2ee   :  { %2386 = vmatprep.subr.mxu0 %v2519_v0 }
 0x2ef   :  { %v1709_v38 = vand.u32 4294901760, %v1708_v37 }
 0x2f0   :  { %2379 = vmatmul.mubr.f32.vlgmr.msra.gmra.mxu0 %v1665_v23 }
 0x2f1   :  { %2372 = vmatpush3.xpose.msra.mxu1 %v1709_v38  ;;  %2387 = vmatpush3.xpose.msra.mxu0 %v1707_v36 }
 0x2f2   :  { %2381 = vmatprep.subr.mxu1 %v2519_v0  ;;  %2388 = vmatprep.mubr.msk.f32.mxu0 %vm2520_vm0, %v2519_v0 }
 0x2f4   :  { %2374 = vmatmul.mubr.f32.vlgmr.msra.gmra.mxu1 %v1664_v20  ;;  %2389 = vmatmul.mubr.f32.vlgmr.msra.gmra.mxu0 %v1664_v20 }
 0x2f5   :  { %2382 = vmatpush3.xpose.msra.mxu1 %v1629_v33  ;;  %2383 = vmatprep.mubr.msk.f32.mxu1 %vm2520_vm0, %v2519_v0 }
 0x2f6   :  { %2391 = vmatprep.subr.mxu1 %v2519_v0 }
 0x2f8   :  { %2384 = vmatmul.mubr.f32.vlgmr.msra.gmra.mxu1 %v1666_v27 }
 0x2f9   :  { %2392 = vmatpush3.xpose.msra.mxu1 %v1629_v33  ;;  %2393 = vmatprep.mubr.msk.f32.mxu1 %vm2520_vm0, %v2519_v0 }
 0x2fc   :  { %2394 = vmatmul.mubr.f32.vlgmr.msra.gmra.mxu1 %v1664_v20 }
 0x3ac   :  { %v1670_v39 = vpop.f32.mrf.mxu0 }
 0x3ad   :  { %v1671_v43 = vadd.f32 %v1670_v39, %v1591_v40 }
 0x3ae   :  { %v2370_v41 = vpop.f32.mrf.mxu0 }
 0x3b0   :  { %v1820_v42 = vpop.f32.mrf.mxu0 }
 0x3b2   :  { %v2380_v44 = vpop.f32.mrf.mxu0 }
 0x3b4   :  { %v1746_v45 = vpop.f32.mrf.mxu1  ;;  %v1968_v46 = vpop.f32.mrf.mxu0 }
 0x3b5   :  { %v1747_v47 = vadd.f32 %v1746_v45, %v1671_v43 }
 0x3b6   :  { %v2375_v48 = vpop.f32.mrf.mxu1  ;;  %v2390_v49 = vpop.f32.mrf.mxu0 }
 0x3b7   :  { %v1821_v50 = vadd.f32 %v1820_v42, %v1747_v47 }
 0x3b8   :  { %v1894_v51 = vpop.f32.mrf.mxu1 }
 0x3b9   :  { %v1895_v52 = vadd.f32 %v1894_v51, %v1821_v50 }
 0x3ba   :  { %v2385_v53 = vpop.f32.mrf.mxu1 }
 0x3bb   :  { %v1969_v0 = vadd.f32 %v1968_v46, %v1895_v52 }
 0x3bc   :  { %v2040_v54 = vpop.f32.mrf.mxu1 }
 0x3bd   :  { %v2041_v55 = vadd.f32 %v2040_v54, %v1969_v0 }
 0x3be   :  { %v2395_v56 = vpop.f32.mrf.mxu1 }
 0x3bf   :  { %2045 = vst.msk [vmem:[#allocation11] sm:$0x1] %vm2044_vm2, %v2041_v55 }
 0x3c0   :  { %2496 = shalt.err (!%p2493_p10)
}
 0x3c1   :  { %2055 = dma.vmem_to_hbm [thread:$0]  %s2053_s13, 16, %s2901_s9, [#allocation5]  }
 0x3c2   :  { %2511 = dma.done.wait [#allocation5], 16  }
 0x3c3   :  { %2512 = vsyncadd [#allocation5], 4294967280 }
 0x3c4   :  { %2059 = vsyncpa [#allocation4], 1 }
 0x3c5   :  { %2060 = vsyncpa [#allocation7], 1 }
 0x3c6   :  { %2061 = vsyncpa [#allocation10], 1 }
 0x3c7   :  { %2062 = vsyncpa [#allocation5], 1 }

</bundles_post_ra>
